<compile_context>
chip_gen: v6e
topology: v6e:2x2x1
jax: 0.10.0
libtpu: 0.0.40
codegen_flags: <defaults>
</compile_context>

<pallas_src>
import jax
import jax.numpy as jnp
from jax.experimental import pallas as pl
from jax.experimental.pallas import tpu as pltpu


def _fused_linear_kernel(x_ref, p_ref, o_ref):
    # x_ref: (B, 3);  p_ref: (4, 2) with rows 0..2 = W_fused, row 3 = b_fused.
    x = x_ref[...]
    p = p_ref[...]
    # Unrolled VPU compute: y = b_fused + sum_k x[:, k] * W_fused[k, :]
    acc = p[3:4, :]                      # (1, 2) bias, broadcasts over batch
    acc = acc + x[:, 0:1] * p[0:1, :]
    acc = acc + x[:, 1:2] * p[1:2, :]
    acc = acc + x[:, 2:3] * p[2:3, :]
    o_ref[...] = acc.astype(o_ref.dtype)


def model_forward(x, w1, b1, w2, b2):
    """x: (B, 3) f32; w1: (3, 4); b1: (4,); w2: (4, 2); b2: (2,) -> (B, 2)."""
    B = x.shape[0]
    # Host-side algebraic fusion of the two Linear layers (no nonlinearity
    # in between, so this is exact up to f32 rounding order).
    w_fused = w1 @ w2                    # (3, 2)
    b_fused = b1 @ w2 + b2               # (2,)
    params = jnp.concatenate([w_fused, b_fused.reshape(1, -1)], axis=0)  # (4, 2)

    return pl.pallas_call(
        _fused_linear_kernel,
        out_shape=jax.ShapeDtypeStruct((B, 2), x.dtype),
        # No grid: whole arrays resident in VMEM, zero per-step overhead.
        in_specs=[
            pl.BlockSpec(memory_space=pltpu.MemorySpace.VMEM),
            pl.BlockSpec(memory_space=pltpu.MemorySpace.VMEM),
        ],
        out_specs=pl.BlockSpec(memory_space=pltpu.MemorySpace.VMEM),
    )(x, params)

    # TODO(synk): if batch B is scaled up, reintroduce a grid tiled over B
    # (512-2048 rows/block, "parallel" semantics) and a lane-dense output layout.


if __name__ == "__main__":
    key = jax.random.PRNGKey(0)
    kx, k1, k2, k3, k4 = jax.random.split(key, 5)

    # Input matching `torch.rand(5, 3)`
    x = jax.random.uniform(kx, (5, 3), dtype=jnp.float32)

    # Deterministic parameter init (shapes from nn.Linear(3,4) and nn.Linear(4,2)),
    # stored as (in_features, out_features) = transpose of PyTorch layout.
    w1 = jax.random.normal(k1, (3, 4), dtype=jnp.float32) * 0.1
    b1 = jax.random.normal(k2, (4,), dtype=jnp.float32) * 0.1
    w2 = jax.random.normal(k3, (4, 2), dtype=jnp.float32) * 0.1
    b2 = jax.random.normal(k4, (2,), dtype=jnp.float32) * 0.1

    out = model_forward(x, w1, b1, w2, b2)
    jax.block_until_ready(out)

    # Pure-JAX reference of the ORIGINAL two-stage forward.
    ref = (x @ w1 + b1) @ w2 + b2
    assert out.shape == (5, 2)
    assert jnp.allclose(out, ref, atol=1e-5, rtol=1e-5)

    print("KERNEL_OK")
</pallas_src>

<mosaic_0001>
module attributes {stable_mosaic.version = 11 : i64} {
  func.func @_fused_linear_kernel(%arg0: memref<5x3xf32, #tpu.memory_space<vmem>>, %arg1: memref<4x2xf32, #tpu.memory_space<vmem>>, %arg2: memref<5x2xf32, #tpu.memory_space<vmem>>) attributes {dimension_semantics = [], scalar_prefetch = 0 : i64, scratch_operands = 0 : i64, tpu.core_type = #tpu.core_type<tc>} {
    %c0 = arith.constant 0 : index
    %c0_0 = arith.constant 0 : index
    %0 = vector.load %arg0[%c0, %c0_0] : memref<5x3xf32, #tpu.memory_space<vmem>>, vector<5x3xf32>
    %c0_1 = arith.constant 0 : index
    %c0_2 = arith.constant 0 : index
    %1 = vector.load %arg1[%c0_1, %c0_2] : memref<4x2xf32, #tpu.memory_space<vmem>>, vector<4x2xf32>
    %2 = vector.extract_strided_slice %1 {offsets = [3, 0], sizes = [1, 2], strides = [1, 1]} : vector<4x2xf32> to vector<1x2xf32>
    %3 = vector.extract_strided_slice %0 {offsets = [0, 0], sizes = [5, 1], strides = [1, 1]} : vector<5x3xf32> to vector<5x1xf32>
    %4 = vector.extract_strided_slice %1 {offsets = [0, 0], sizes = [1, 2], strides = [1, 1]} : vector<4x2xf32> to vector<1x2xf32>
    %5 = vector.broadcast %3 : vector<5x1xf32> to vector<5x2xf32>
    %6 = vector.broadcast %4 : vector<1x2xf32> to vector<5x2xf32>
    %7 = arith.mulf %5, %6 : vector<5x2xf32>
    %8 = vector.broadcast %2 : vector<1x2xf32> to vector<5x2xf32>
    %9 = arith.addf %8, %7 : vector<5x2xf32>
    %10 = vector.extract_strided_slice %0 {offsets = [0, 1], sizes = [5, 1], strides = [1, 1]} : vector<5x3xf32> to vector<5x1xf32>
    %11 = vector.extract_strided_slice %1 {offsets = [1, 0], sizes = [1, 2], strides = [1, 1]} : vector<4x2xf32> to vector<1x2xf32>
    %12 = vector.broadcast %10 : vector<5x1xf32> to vector<5x2xf32>
    %13 = vector.broadcast %11 : vector<1x2xf32> to vector<5x2xf32>
    %14 = arith.mulf %12, %13 : vector<5x2xf32>
    %15 = arith.addf %9, %14 : vector<5x2xf32>
    %16 = vector.extract_strided_slice %0 {offsets = [0, 2], sizes = [5, 1], strides = [1, 1]} : vector<5x3xf32> to vector<5x1xf32>
    %17 = vector.extract_strided_slice %1 {offsets = [2, 0], sizes = [1, 2], strides = [1, 1]} : vector<4x2xf32> to vector<1x2xf32>
    %18 = vector.broadcast %16 : vector<5x1xf32> to vector<5x2xf32>
    %19 = vector.broadcast %17 : vector<1x2xf32> to vector<5x2xf32>
    %20 = arith.mulf %18, %19 : vector<5x2xf32>
    %21 = arith.addf %15, %20 : vector<5x2xf32>
    %c0_3 = arith.constant 0 : index
    %c0_4 = arith.constant 0 : index
    %22 = vector.load %arg2[%c0_3, %c0_4] : memref<5x2xf32, #tpu.memory_space<vmem>>, vector<5x2xf32>
    tpu.vector_store %arg2[%c0_3, %c0_4], %21 {strides = array<i32>} : memref<5x2xf32, #tpu.memory_space<vmem>>, vector<5x2xf32>,
    return
  }
}

</mosaic_0001>

<bundles_post_ra>
// kernel: tpu_custom_call.1
= control target key start
LH: loop header
LB: loop body
LE: loop exit
PB: predicated region body
PF: predicated region fallthrough
CT: control target
= control target key end

     0   :  { %v61_v0 = vmov 0   ;;  %v62_v2 = vmov 2   ;;  %v63_v3 = vmov 1   ;;  %v18_v4 = vlaneseq  ;;  %s88_s0 = inlined_call_operand.vmem [shape: f32[5,3], index: 0, kind: input, shape index: {}]   ;;  %s89_s1 = inlined_call_operand.vmem [shape: f32[4,2], index: 1, kind: input, shape index: {}]   ;;  %s90_s2 = inlined_call_operand.vmem [shape: f32[5,2], index: 2, kind: output, shape index: {}]  }
   0x1   :  { %57 = vset.pattern.permute.xlu0 %v61_v0  ;;  %v11_v1 = vld [vmem:[%s88_s0] sm:$0x1f]  ;;  %59 = vset.pattern.permute.xlu1 %v62_v2  ;;  %vm48_vm0 = vcmask 12288  }
   0x2   :  { %15 = vperm.xlu0 %57, %v11_v1   ;;  %39 = vperm.xlu1 %59, %v11_v1   ;;  %v19_v5 = vshrl.u32 %v18_v4, 7  ;;  %v12_v7 = vld [vmem:[%s89_s1] sm:$0xf] }
   0x4   :  { %v20_v6 = vsub.s32 0, %v19_v5  ;;  %v25_v9 = vsub.s32 3, %v19_v5  ;;  %v34_v10 = vsub.s32 1, %v19_v5  ;;  %v44_v11 = vsub.s32 2, %v19_v5 }
   0x6   :  { %58 = vset.pattern.permute.xlu0 %v63_v3  ;;  %v21_v8 = vrot.slane %v12_v7, %v20_v6  ;;  %v26_v13 = vrot.slane %v12_v7, %v25_v9  ;;  %v35_v15 = vrot.slane %v12_v7, %v34_v10  ;;  %v45_v16 = vrot.slane %v12_v7, %v44_v11 }
   0x7   :  { %29 = vperm.xlu0 %58, %v11_v1  }
   0xb   :  { %60 = vset.pattern.permute.xlu0 %v62_v2 }
  0x7d   :  { %v16_v12 = vpop.permute.xlu0 %15  ;;  %v40_v17 = vpop.permute.xlu1 %39 }
  0x7e   :  { %v22_v14 = vmul.f32 %v21_v8, %v16_v12  ;;  %v46_v21 = vmul.f32 %v45_v16, %v40_v17 }
  0x80   :  { %v27_v19 = vadd.f32 %v26_v13, %v22_v14 }
  0x82   :  { %v30_v18 = vpop.permute.xlu0 %29 }
  0x83   :  { %v36_v20 = vmul.f32 %v35_v15, %v30_v18 }
  0x85   :  { %v37_v22 = vadd.f32 %v36_v20, %v27_v19 }
  0x87   :  { %v47_v23 = vadd.f32 %v46_v21, %v37_v22 }
  0x89   :  { %49 = vst.msk [vmem:[%s90_s2] sm:$0x1f] %vm48_vm0, %v47_v23 }

</bundles_post_ra>
